<compile_context>
chip_gen: v7x
topology: tpu7x:2x2x1
jax: 0.10.0
libtpu: 0.0.40
codegen_flags: <defaults>
</compile_context>

<pallas_src>
import functools
import math

import jax
import jax.numpy as jnp
from jax.experimental import pallas as pl
from jax.experimental.pallas import tpu as pltpu

# Default tile sizes (production-ish; clamped to the actual dims for small inputs).
_Q_BLOCK = 256       # query rows per attention tile
_K_BLOCK = 512       # key/value rows per flash inner step
_S_BLOCK = 256       # sequence rows per FFN tile
_DFF_BLOCK = 2048    # FFN hidden columns streamed per accumulation step


@functools.lru_cache(maxsize=None)
def _vmem_limit_bytes():
    """~65% of the local generation's physical VMEM (v7x 64 MiB -> ~41 MiB,
    v5e/v6e 128 MiB -> ~85 MiB) so pipeline buffers keep headroom."""
    try:
        cap = pltpu.get_tpu_info().vmem_capacity_bytes
    except Exception:
        cap = 128 * 1024 * 1024
    return int(cap * 0.65)


def _compiler_params(dimension_semantics):
    return pltpu.CompilerParams(dimension_semantics=dimension_semantics,
                                vmem_limit_bytes=_vmem_limit_bytes())


def _as_int8_mask(mask):
    """int8 mask = 4x less HBM traffic than a float32 mask."""
    if mask.dtype == jnp.int8:
        return mask
    return (mask != 0).astype(jnp.int8)


# --------------------------- in-kernel helpers ------------------------------

def _layer_norm(x, alpha, beta, eps, recip_approx):
    """torch-style LayerNorm: alpha*(x-mean)/(std+eps)+beta, UNBIASED std (N-1)."""
    n = x.shape[-1]
    mean = jnp.mean(x, axis=-1, keepdims=True)
    diff = x - mean
    var = jnp.sum(diff * diff, axis=-1, keepdims=True) * (1.0 / (n - 1))
    inv = pl.reciprocal(jnp.sqrt(var) + eps, approx=recip_approx)   # EUP, off the VALU
    return alpha * diff * inv + beta


# ----------------------------- Pallas kernels -------------------------------

def _kv_projection_kernel(kv_ref, alpha_ref, beta_ref, wk_ref, bk_ref, wv_ref,
                          bv_ref, k_ref, v_ref, *, eps, ln_kv, num_heads,
                          mm_dtype, recip_approx):
    """[LN?] -> K/V projection, full-width (tsk,D)@(D,D) matmuls, per-head output."""
    kv = kv_ref[0].astype(jnp.float32)                             # (tsk, D)
    if ln_kv:
        kv = _layer_norm(kv, alpha_ref[...], beta_ref[...], eps, recip_approx)
    kvm = kv.astype(mm_dtype)
    k_full = (jnp.dot(kvm, wk_ref[...], preferred_element_type=jnp.float32)
              + bk_ref[...]).astype(k_ref.dtype)                   # (tsk, D)
    v_full = (jnp.dot(kvm, wv_ref[...], preferred_element_type=jnp.float32)
              + bv_ref[...]).astype(v_ref.dtype)
    dk = k_ref.shape[-1]
    for head in range(num_heads):                                  # static lane slices
        k_ref[0, head] = k_full[:, head * dk:(head + 1) * dk]
        v_ref[0, head] = v_full[:, head * dk:(head + 1) * dk]


def _flash_attention_kernel(x_ref, k_ref, v_ref, mask_ref, alpha_ref, beta_ref,
                            wq_ref, bq_ref, wo_ref, bo_ref, o_ref,
                            q_sc, m_sc, l_sc, acc_sc,
                            *, eps, ln_q, ln_out, num_heads, mm_dtype,
                            recip_approx, seq_k, block_k):
    """[LN?] -> Q proj -> flash attention over Sk tiles -> WO -> +residual -> [LN?]."""
    ki = pl.program_id(2)
    num_k = pl.num_programs(2)
    _, tq, d_model = x_ref.shape
    dk = d_model // num_heads

    @pl.when(ki == 0)
    def _init():
        x = x_ref[0].astype(jnp.float32)                           # (tq, D)
        q_in = (_layer_norm(x, alpha_ref[...], beta_ref[...], eps, recip_approx)
                if ln_q else x)
        # Full-width lane-dense Q projection (N = D on the MXU); 1/sqrt(dk) is
        # folded into Q so the scores come out pre-scaled.
        q_proj = jnp.dot(q_in.astype(mm_dtype), wq_ref[...],
                         preferred_element_type=jnp.float32) + bq_ref[...]
        q_proj = (q_proj * (1.0 / math.sqrt(dk))).astype(mm_dtype)
        for head in range(num_heads):                              # static lane slices
            q_sc[head] = q_proj[:, head * dk:(head + 1) * dk]
        m_sc[...] = jnp.full(m_sc.shape, -jnp.inf, m_sc.dtype)
        l_sc[...] = jnp.zeros(l_sc.shape, l_sc.dtype)
        acc_sc[...] = jnp.zeros(acc_sc.shape, acc_sc.dtype)

    kh = k_ref[0]                                                  # (h, tsk, dk)
    vh = v_ref[0]
    s = jnp.einsum("hqe,hke->hqk", q_sc[...], kh,
                   preferred_element_type=jnp.float32)             # (h, tq, tsk)

    # torch: masked_fill_(mask == 0, 1e-09) -- tiny fill, NOT -inf (reference-faithful).
    masked = (mask_ref[0].astype(jnp.int32) == 0)[None, :, :]
    s = jnp.where(masked, jnp.float32(1e-9), s)

    if seq_k % block_k:   # ragged Sk: padded tail columns must contribute exactly 0
        col_s = ki * block_k + jax.lax.broadcasted_iota(jnp.int32, (1, 1, block_k), 2)
        s = jnp.where(col_s < seq_k, s, -jnp.inf)
        col_v = ki * block_k + jax.lax.broadcasted_iota(jnp.int32, (1, block_k, 1), 1)
        vh = jnp.where(col_v < seq_k, vh, jnp.zeros_like(vh))

    # Online-softmax update (normalisation deferred to the finalize step).
    m_prev = m_sc[...]
    m_new = jnp.maximum(m_prev, jnp.max(s, axis=-1, keepdims=True))
    corr = jnp.exp(m_prev - m_new)
    p = jnp.exp(s - m_new)
    l_sc[...] = corr * l_sc[...] + jnp.sum(p, axis=-1, keepdims=True)
    acc_sc[...] = corr * acc_sc[...] + jnp.einsum(
        "hqk,hke->hqe", p.astype(mm_dtype), vh, preferred_element_type=jnp.float32)
    m_sc[...] = m_new

    @pl.when(ki == num_k - 1)
    def _finalize():
        ctx = acc_sc[...] * pl.reciprocal(l_sc[...], approx=recip_approx)  # (h, tq, dk)
        wo = wo_ref[...]
        # Output projection fused with the head reduction: accumulate h partial
        # (tq, dk) @ (dk, D) products straight into one f32 (tq, D) value.
        out = jnp.zeros((tq, d_model), jnp.float32)
        for head in range(num_heads):
            out = out + jnp.dot(ctx[head].astype(mm_dtype),
                                wo[head * dk:(head + 1) * dk, :],
                                preferred_element_type=jnp.float32)
        out = out + bo_ref[...]
        y = x_ref[0].astype(jnp.float32) + out                     # residual (dropout = id)
        if ln_out:
            y = _layer_norm(y, alpha_ref[...], beta_ref[...], eps, recip_approx)
        o_ref[0] = y.astype(o_ref.dtype)


def _fused_ffn_kernel(x_ref, alpha_ref, beta_ref, w1_ref, b1_ref, w2_ref, b2_ref,
                      o_ref, hin_sc, acc_sc, *, eps, ln_pre, ln_post, mm_dtype,
                      recip_approx):
    """[LN?] -> Linear -> ReLU -> Linear (Dff streamed/accumulated) -> +res -> [LN?]."""
    f = pl.program_id(2)

    @pl.when(f == 0)
    def _init():
        x = x_ref[0].astype(jnp.float32)
        hin_sc[...] = (_layer_norm(x, alpha_ref[...], beta_ref[...], eps, recip_approx)
                       if ln_pre else x)
        acc_sc[...] = jnp.zeros(acc_sc.shape, acc_sc.dtype)

    hid = jnp.dot(hin_sc[...].astype(mm_dtype), w1_ref[...],
                  preferred_element_type=jnp.float32) + b1_ref[...]
    hid = jnp.maximum(hid, 0.0)                                    # ReLU (dropout = id)
    acc_sc[...] += jnp.dot(hid.astype(mm_dtype), w2_ref[...],
                           preferred_element_type=jnp.float32)

    @pl.when(f == pl.num_programs(2) - 1)
    def _finalize():
        y = x_ref[0].astype(jnp.float32) + acc_sc[...] + b2_ref[...]
        if ln_post:
            y = _layer_norm(y, alpha_ref[...], beta_ref[...], eps, recip_approx)
        o_ref[0] = y.astype(o_ref.dtype)


# ---------------------------- host-side wrappers -----------------------------

def _project_kv(kv, ln_p, attn_p, *, num_heads, eps, ln_kv, mm_dtype,
                recip_approx, k_block=_K_BLOCK):
    """Hoisted K/V [LN]+projection: (B,Sk,D) -> two (B,h,Sk,dk) arrays in mm_dtype."""
    B, Sk, D = kv.shape
    dk = D // num_heads
    tsk = min(k_block, Sk)
    kernel = functools.partial(_kv_projection_kernel, eps=eps, ln_kv=ln_kv,
                               num_heads=num_heads, mm_dtype=mm_dtype,
                               recip_approx=recip_approx)
    const2 = lambda b, s: (0, 0)
    return pl.pallas_call(
        kernel,
        out_shape=(jax.ShapeDtypeStruct((B, num_heads, Sk, dk), mm_dtype),
                   jax.ShapeDtypeStruct((B, num_heads, Sk, dk), mm_dtype)),
        grid=(B, pl.cdiv(Sk, tsk)),
        in_specs=[
            pl.BlockSpec((1, tsk, D), lambda b, s: (b, s, 0)),     # K/V source
            pl.BlockSpec((1, D), const2),                          # LN alpha
            pl.BlockSpec((1, D), const2),                          # LN bias
            pl.BlockSpec((D, D), const2),                          # WK
            pl.BlockSpec((1, D), const2),                          # bK
            pl.BlockSpec((D, D), const2),                          # WV
            pl.BlockSpec((1, D), const2),                          # bV
        ],
        out_specs=(
            pl.BlockSpec((1, num_heads, tsk, dk), lambda b, s: (b, 0, s, 0)),
            pl.BlockSpec((1, num_heads, tsk, dk), lambda b, s: (b, 0, s, 0)),
        ),
        compiler_params=_compiler_params(("parallel", "parallel")),
    )(kv, ln_p["alpha"], ln_p["bias"],
      attn_p["wk"], attn_p["bk"], attn_p["wv"], attn_p["bv"])


def _flash_attention(x, k_heads, v_heads, mask, ln_p, attn_p, *, num_heads, eps,
                     ln_q, ln_out, mm_dtype, recip_approx,
                     q_block=_Q_BLOCK, k_block=_K_BLOCK):
    """Fused [LN?] + MHA (flash over Sk) + residual + [LN?]."""
    B, Sq, D = x.shape
    Sk = k_heads.shape[2]
    dk = D // num_heads
    tq = min(q_block, Sq)
    tsk = min(k_block, Sk)
    kernel = functools.partial(
        _flash_attention_kernel, eps=eps, ln_q=ln_q, ln_out=ln_out,
        num_heads=num_heads, mm_dtype=mm_dtype, recip_approx=recip_approx,
        seq_k=Sk, block_k=tsk)
    const2 = lambda b, qi, ki: (0, 0)
    return pl.pallas_call(
        kernel,
        out_shape=jax.ShapeDtypeStruct((B, Sq, D), x.dtype),
        grid=(B, pl.cdiv(Sq, tq), pl.cdiv(Sk, tsk)),
        in_specs=[
            pl.BlockSpec((1, tq, D), lambda b, qi, ki: (b, qi, 0)),            # x (Q + residual)
            pl.BlockSpec((1, num_heads, tsk, dk), lambda b, qi, ki: (b, 0, ki, 0)),  # K
            pl.BlockSpec((1, num_heads, tsk, dk), lambda b, qi, ki: (b, 0, ki, 0)),  # V
            pl.BlockSpec((1, tq, tsk), lambda b, qi, ki: (b, qi, ki)),         # mask (int8)
            pl.BlockSpec((1, D), const2),                                      # LN alpha
            pl.BlockSpec((1, D), const2),                                      # LN bias
            pl.BlockSpec((D, D), const2),                                      # WQ
            pl.BlockSpec((1, D), const2),                                      # bQ
            pl.BlockSpec((D, D), const2),                                      # WO
            pl.BlockSpec((1, D), const2),                                      # bO
        ],
        out_specs=pl.BlockSpec((1, tq, D), lambda b, qi, ki: (b, qi, 0)),
        scratch_shapes=[
            pltpu.VMEM((num_heads, tq, dk), mm_dtype),     # Q heads (pre-scaled)
            pltpu.VMEM((num_heads, tq, 1), jnp.float32),   # running max
            pltpu.VMEM((num_heads, tq, 1), jnp.float32),   # running sum
            pltpu.VMEM((num_heads, tq, dk), jnp.float32),  # unnormalised context acc
        ],
        compiler_params=_compiler_params(("parallel", "parallel", "arbitrary")),
    )(x, k_heads, v_heads, mask, ln_p["alpha"], ln_p["bias"],
      attn_p["wq"], attn_p["bq"], attn_p["wo"], attn_p["bo"])


def _fused_ffn(x, ln_p, ffn_p, *, eps, ln_pre, ln_post, mm_dtype, recip_approx,
               s_block=_S_BLOCK, dff_block=_DFF_BLOCK):
    """Fused [LN?] + FFN (Dff streamed with f32 accumulator) + residual + [LN?]."""
    B, S, D = x.shape
    Dff = ffn_p["w1"].shape[1]
    ts = min(s_block, S)
    tdff = min(dff_block, Dff)
    if Dff % tdff:
        # TODO(synk): mask ragged Dff tiles instead of falling back to one step.
        tdff = Dff
    kernel = functools.partial(_fused_ffn_kernel, eps=eps, ln_pre=ln_pre,
                               ln_post=ln_post, mm_dtype=mm_dtype,
                               recip_approx=recip_approx)
    const2 = lambda b, s, f: (0, 0)
    return pl.pallas_call(
        kernel,
        out_shape=jax.ShapeDtypeStruct((B, S, D), x.dtype),
        grid=(B, pl.cdiv(S, ts), Dff // tdff),
        in_specs=[
            pl.BlockSpec((1, ts, D), lambda b, s, f: (b, s, 0)),   # x (input + residual)
            pl.BlockSpec((1, D), const2),                          # LN alpha
            pl.BlockSpec((1, D), const2),                          # LN bias
            pl.BlockSpec((D, tdff), lambda b, s, f: (0, f)),       # W1 column block
            pl.BlockSpec((1, tdff), lambda b, s, f: (0, f)),       # b1 block
            pl.BlockSpec((tdff, D), lambda b, s, f: (f, 0)),       # W2 row block
            pl.BlockSpec((1, D), const2),                          # b2
        ],
        out_specs=pl.BlockSpec((1, ts, D), lambda b, s, f: (b, s, 0)),
        scratch_shapes=[
            pltpu.VMEM((ts, D), jnp.float32),   # LN'd / raw input stash
            pltpu.VMEM((ts, D), jnp.float32),   # f32 output accumulator
        ],
        compiler_params=_compiler_params(("parallel", "parallel", "arbitrary")),
    )(x, ln_p["alpha"], ln_p["bias"],
      ffn_p["w1"], ffn_p["b1"], ffn_p["w2"], ffn_p["b2"])


# ------------------------- parameter prep (hoisted) --------------------------

def prepare_decoder_params(params, mm_dtype=jnp.bfloat16):
    """Host-side weight prep (dtype cast, bias reshape). Call ONCE at model setup."""
    def prep_attn(p):
        return dict(
            wq=p["wq"].astype(mm_dtype), bq=p["bq"].reshape(1, -1).astype(jnp.float32),
            wk=p["wk"].astype(mm_dtype), bk=p["bk"].reshape(1, -1).astype(jnp.float32),
            wv=p["wv"].astype(mm_dtype), bv=p["bv"].reshape(1, -1).astype(jnp.float32),
            wo=p["wo"].astype(mm_dtype), bo=p["bo"].reshape(1, -1).astype(jnp.float32))

    def prep_ln(p):
        return dict(alpha=p["alpha"].reshape(1, -1).astype(jnp.float32),
                    bias=p["bias"].reshape(1, -1).astype(jnp.float32))

    return dict(
        self_attn=prep_attn(params["self_attn"]),
        cross_attn=prep_attn(params["cross_attn"]),
        ffn=dict(w1=params["ffn"]["w1"].astype(mm_dtype),
                 b1=params["ffn"]["b1"].reshape(1, -1).astype(jnp.float32),
                 w2=params["ffn"]["w2"].astype(mm_dtype),
                 b2=params["ffn"]["b2"].reshape(1, -1).astype(jnp.float32)),
        layer_norms=[prep_ln(p) for p in params["layer_norms"]],
        mm_dtype=mm_dtype,
    )


def decoder_block_forward(x, encoder_output, src_mask, tgt_mask, prepared, num_heads,
                          norm_first=True, eps=1e-6,
                          q_block=_Q_BLOCK, k_block=_K_BLOCK,
                          s_block=_S_BLOCK, dff_block=_DFF_BLOCK):
    """Pallas implementation of DecoderBlock.forward (dropout = identity)."""
    mm_dtype = prepared["mm_dtype"]
    recip_approx = mm_dtype == jnp.bfloat16          # exact reciprocal for f32 checks
    ln = prepared["layer_norms"]
    sa, ca, ff = prepared["self_attn"], prepared["cross_attn"], prepared["ffn"]

    tgt_mask = _as_int8_mask(tgt_mask)               # callers should pass int8 directly
    src_mask = _as_int8_mask(src_mask)

    common = dict(eps=eps, mm_dtype=mm_dtype, recip_approx=recip_approx)

    # Self attention: K/V projection hoisted (pre-norm uses LN0(x) for Q and K/V).
    k_sa, v_sa = _project_kv(x, ln[0], sa, num_heads=num_heads,
                             ln_kv=norm_first, k_block=k_block, **common)
    x = _flash_attention(x, k_sa, v_sa, tgt_mask, ln[0], sa, num_heads=num_heads,
                         ln_q=norm_first, ln_out=not norm_first,
                         q_block=q_block, k_block=k_block, **common)

    # Cross attention: K/V always come from the raw encoder output.
    k_ca, v_ca = _project_kv(encoder_output, ln[1], ca, num_heads=num_heads,
                             ln_kv=False, k_block=k_block, **common)
    x = _flash_attention(x, k_ca, v_ca, src_mask, ln[1], ca, num_heads=num_heads,
                         ln_q=norm_first, ln_out=not norm_first,
                         q_block=q_block, k_block=k_block, **common)

    # Feed-forward.
    x = _fused_ffn(x, ln[2], ff, ln_pre=norm_first, ln_post=not norm_first,
                   s_block=s_block, dff_block=dff_block, **common)
    return x


# ---------------------------- pure-JAX reference -----------------------------

def _ref_layernorm(x, alpha, bias, eps=1e-6):
    mean = x.mean(-1, keepdims=True)
    var = jnp.sum((x - mean) ** 2, -1, keepdims=True) / (x.shape[-1] - 1)
    return alpha * (x - mean) / (jnp.sqrt(var) + eps) + bias


def _ref_mha(q, k, v, mask, p, h):
    B, Sq, D = q.shape
    Sk = k.shape[1]
    d_k = D // h
    qp = (q @ p["wq"] + p["bq"]).reshape(B, Sq, h, d_k).transpose(0, 2, 1, 3)
    kp = (k @ p["wk"] + p["bk"]).reshape(B, Sk, h, d_k).transpose(0, 2, 1, 3)
    vp = (v @ p["wv"] + p["bv"]).reshape(B, Sk, h, d_k).transpose(0, 2, 1, 3)
    scores = (qp @ kp.transpose(0, 1, 3, 2)) / math.sqrt(d_k)
    scores = jnp.where(mask[:, None, :, :] == 0, 1e-9, scores)
    attn = jax.nn.softmax(scores, axis=-1)
    out = (attn @ vp).transpose(0, 2, 1, 3).reshape(B, Sq, D)
    return out @ p["wo"] + p["bo"]


def _ref_decoder_block(x, enc, src_mask, tgt_mask, params, h, norm_first=True):
    ln = params["layer_norms"]
    p_sa, p_ca, p_ff = params["self_attn"], params["cross_attn"], params["ffn"]

    def ffn(y):
        return jnp.maximum(y @ p_ff["w1"] + p_ff["b1"], 0.0) @ p_ff["w2"] + p_ff["b2"]

    if norm_first:
        y = _ref_layernorm(x, ln[0]["alpha"], ln[0]["bias"])
        x = x + _ref_mha(y, y, y, tgt_mask, p_sa, h)
        y = _ref_layernorm(x, ln[1]["alpha"], ln[1]["bias"])
        x = x + _ref_mha(y, enc, enc, src_mask, p_ca, h)
        y = _ref_layernorm(x, ln[2]["alpha"], ln[2]["bias"])
        x = x + ffn(y)
    else:
        x = x + _ref_mha(x, x, x, tgt_mask, p_sa, h)
        x = _ref_layernorm(x, ln[0]["alpha"], ln[0]["bias"])
        x = x + _ref_mha(x, enc, enc, src_mask, p_ca, h)
        x = _ref_layernorm(x, ln[1]["alpha"], ln[1]["bias"])
        x = x + ffn(x)
        x = _ref_layernorm(x, ln[2]["alpha"], ln[2]["bias"])
    return x


# ----------------------------------- main ------------------------------------

def _init_linear(key, d_in, d_out, scale=0.05):
    kw, kb = jax.random.split(key)
    return (jax.random.normal(kw, (d_in, d_out), jnp.float32) * scale,
            jax.random.normal(kb, (d_out,), jnp.float32) * scale)


def _init_params(key, d_model, d_ff):
    keys = jax.random.split(key, 10)

    def attn(ks):
        wq, bq = _init_linear(ks[0], d_model, d_model)
        wk, bk = _init_linear(ks[1], d_model, d_model)
        wv, bv = _init_linear(ks[2], d_model, d_model)
        wo, bo = _init_linear(ks[3], d_model, d_model)
        return dict(wq=wq, bq=bq, wk=wk, bk=bk, wv=wv, bv=bv, wo=wo, bo=bo)

    w1, b1 = _init_linear(keys[8], d_model, d_ff)
    w2, b2 = _init_linear(keys[9], d_ff, d_model)
    return dict(
        self_attn=attn(keys[0:4]),
        cross_attn=attn(keys[4:8]),
        ffn=dict(w1=w1, b1=b1, w2=w2, b2=b2),
        layer_norms=[dict(alpha=jnp.ones((d_model,), jnp.float32),
                          bias=jnp.zeros((d_model,), jnp.float32))
                     for _ in range(3)],
    )


if __name__ == "__main__":
    B, S_TGT, S_SRC = 2, 8, 10
    D_MODEL, H, D_FF = 32, 4, 64

    key = jax.random.PRNGKey(0)
    kx, ke, kp = jax.random.split(key, 3)
    x = jax.random.normal(kx, (B, S_TGT, D_MODEL), jnp.float32)
    enc_out = jax.random.normal(ke, (B, S_SRC, D_MODEL), jnp.float32)
    params = _init_params(kp, D_MODEL, D_FF)

    # causal target mask (B, S_tgt, S_tgt); full source mask (B, S_tgt, S_src)
    tgt_mask = jnp.broadcast_to(
        jnp.tril(jnp.ones((S_TGT, S_TGT), jnp.float32)), (B, S_TGT, S_TGT))
    src_mask = jnp.ones((B, S_TGT, S_SRC), jnp.float32)

    # Weight prep happens ONCE here (hoisted out of the forward pass).
    prepared_f32 = prepare_decoder_params(params, mm_dtype=jnp.float32)
    prepared_bf16 = prepare_decoder_params(params, mm_dtype=jnp.bfloat16)

    # 1) f32 MXU path: tight numerical check, both pre-norm and post-norm variants.
    for norm_first in (True, False):
        ref = _ref_decoder_block(x, enc_out, src_mask, tgt_mask, params, H,
                                 norm_first=norm_first)
        out = decoder_block_forward(x, enc_out, src_mask, tgt_mask,
                                    prepared_f32, H, norm_first=norm_first)
        out = jax.block_until_ready(out)
        assert out.shape == (B, S_TGT, D_MODEL)
        assert jnp.allclose(out, ref, atol=1e-3, rtol=1e-3), (
            f"f32 mismatch vs. reference (norm_first={norm_first})")

    # 2) bf16 MXU path (production: bf16 operands, f32 accumulation).
    ref = _ref_decoder_block(x, enc_out, src_mask, tgt_mask, params, H,
                             norm_first=True)
    out_bf16 = decoder_block_forward(x, enc_out, src_mask, tgt_mask,
                                     prepared_bf16, H, norm_first=True)
    out_bf16 = jax.block_until_ready(out_bf16)
    assert out_bf16.shape == (B, S_TGT, D_MODEL)
    assert jnp.allclose(out_bf16, ref, atol=5e-2, rtol=5e-2), "bf16 mismatch vs. reference"

    print("KERNEL_OK")
</pallas_src>

<mosaic_0001>
module attributes {stable_mosaic.version = 11 : i64} {
  func.func @_kv_projection_kernel(%arg0: i32, %arg1: i32, %arg2: memref<1x8x32xf32, #tpu.memory_space<vmem>>, %arg3: memref<1x32xf32, #tpu.memory_space<vmem>>, %arg4: memref<1x32xf32, #tpu.memory_space<vmem>>, %arg5: memref<32x32xf32, #tpu.memory_space<vmem>>, %arg6: memref<1x32xf32, #tpu.memory_space<vmem>>, %arg7: memref<32x32xf32, #tpu.memory_space<vmem>>, %arg8: memref<1x32xf32, #tpu.memory_space<vmem>>, %arg9: memref<1x4x8x8xf32, #tpu.memory_space<vmem>>, %arg10: memref<1x4x8x8xf32, #tpu.memory_space<vmem>>) attributes {dimension_semantics = [#tpu.dimension_semantics<parallel>, #tpu.dimension_semantics<parallel>], iteration_bounds = array<i64: 2, 1>, scalar_prefetch = 0 : i64, scratch_operands = 0 : i64, tpu.core_type = #tpu.core_type<tc>, window_params = [{transform_indices = @transform_0, window_bounds = array<i64: 1, 8, 32>}, {pipeline_mode = #tpu.pipeline_mode<synchronous>, transform_indices = @transform_1, window_bounds = array<i64: 1, 32>}, {pipeline_mode = #tpu.pipeline_mode<synchronous>, transform_indices = @transform_2, window_bounds = array<i64: 1, 32>}, {pipeline_mode = #tpu.pipeline_mode<synchronous>, transform_indices = @transform_3, window_bounds = array<i64: 32, 32>}, {pipeline_mode = #tpu.pipeline_mode<synchronous>, transform_indices = @transform_4, window_bounds = array<i64: 1, 32>}, {pipeline_mode = #tpu.pipeline_mode<synchronous>, transform_indices = @transform_5, window_bounds = array<i64: 32, 32>}, {pipeline_mode = #tpu.pipeline_mode<synchronous>, transform_indices = @transform_6, window_bounds = array<i64: 1, 32>}, {transform_indices = @transform_7, window_bounds = array<i64: 1, 4, 8, 8>}, {transform_indices = @transform_8, window_bounds = array<i64: 1, 4, 8, 8>}]} {
    %c0 = arith.constant 0 : index
    %c0_0 = arith.constant 0 : index
    %c0_1 = arith.constant 0 : index
    %0 = vector.load %arg2[%c0, %c0_0, %c0_1] : memref<1x8x32xf32, #tpu.memory_space<vmem>>, vector<1x8x32xf32>
    %1 = vector.shape_cast %0 : vector<1x8x32xf32> to vector<8x32xf32>
    %c0_2 = arith.constant 0 : index
    %c0_3 = arith.constant 0 : index
    %2 = vector.load %arg3[%c0_2, %c0_3] : memref<1x32xf32, #tpu.memory_space<vmem>>, vector<1x32xf32>
    %c0_4 = arith.constant 0 : index
    %c0_5 = arith.constant 0 : index
    %3 = vector.load %arg4[%c0_4, %c0_5] : memref<1x32xf32, #tpu.memory_space<vmem>>, vector<1x32xf32>
    %cst = arith.constant dense<0.000000e+00> : vector<8xf32>
    %4 = vector.multi_reduction <add>, %1, %cst [1] : vector<8x32xf32> to vector<8xf32>
    %5 = vector.shape_cast %4 : vector<8xf32> to vector<8x1xf32>
    %cst_6 = arith.constant 3.200000e+01 : f32
    %6 = vector.broadcast %cst_6 : f32 to vector<8x1xf32>
    %7 = arith.divf %5, %6 : vector<8x1xf32>
    %8 = vector.broadcast %7 : vector<8x1xf32> to vector<8x32xf32>
    %9 = arith.subf %1, %8 : vector<8x32xf32>
    %10 = arith.mulf %9, %9 : vector<8x32xf32>
    %cst_7 = arith.constant dense<0.000000e+00> : vector<8xf32>
    %11 = vector.multi_reduction <add>, %10, %cst_7 [1] : vector<8x32xf32> to vector<8xf32>
    %12 = vector.shape_cast %11 : vector<8xf32> to vector<8x1xf32>
    %cst_8 = arith.constant 0.0322580636 : f32
    %13 = vector.broadcast %cst_8 : f32 to vector<8x1xf32>
    %14 = arith.mulf %12, %13 : vector<8x1xf32>
    %15 = math.sqrt %14 : vector<8x1xf32>
    %cst_9 = arith.constant 9.99999997E-7 : f32
    %16 = vector.broadcast %cst_9 : f32 to vector<8x1xf32>
    %17 = arith.addf %15, %16 : vector<8x1xf32>
    %18 = tpu.reciprocal %17 : vector<8x1xf32> -> vector<8x1xf32>
    %19 = vector.broadcast %2 : vector<1x32xf32> to vector<8x32xf32>
    %20 = arith.mulf %19, %9 : vector<8x32xf32>
    %21 = vector.broadcast %18 : vector<8x1xf32> to vector<8x32xf32>
    %22 = arith.mulf %20, %21 : vector<8x32xf32>
    %23 = vector.broadcast %3 : vector<1x32xf32> to vector<8x32xf32>
    %24 = arith.addf %22, %23 : vector<8x32xf32>
    %c0_10 = arith.constant 0 : index
    %c0_11 = arith.constant 0 : index
    %25 = vector.load %arg5[%c0_10, %c0_11] : memref<32x32xf32, #tpu.memory_space<vmem>>, vector<32x32xf32>
    %cst_12 = arith.constant dense<0.000000e+00> : vector<8x32xf32>
    %26 = tpu.matmul %24, %25, %cst_12 {dimension_numbers = #tpu.dot_dimension_numbers<[1], [0], [0], [1], [0, 0, 1, 1], [], []>} : vector<8x32xf32>, vector<32x32xf32>, vector<8x32xf32> -> vector<8x32xf32>
    %c0_13 = arith.constant 0 : index
    %c0_14 = arith.constant 0 : index
    %27 = vector.load %arg6[%c0_13, %c0_14] : memref<1x32xf32, #tpu.memory_space<vmem>>, vector<1x32xf32>
    %28 = vector.broadcast %27 : vector<1x32xf32> to vector<8x32xf32>
    %29 = arith.addf %26, %28 : vector<8x32xf32>
    %c0_15 = arith.constant 0 : index
    %c0_16 = arith.constant 0 : index
    %30 = vector.load %arg7[%c0_15, %c0_16] : memref<32x32xf32, #tpu.memory_space<vmem>>, vector<32x32xf32>
    %cst_17 = arith.constant dense<0.000000e+00> : vector<8x32xf32>
    %31 = tpu.matmul %24, %30, %cst_17 {dimension_numbers = #tpu.dot_dimension_numbers<[1], [0], [0], [1], [0, 0, 1, 1], [], []>} : vector<8x32xf32>, vector<32x32xf32>, vector<8x32xf32> -> vector<8x32xf32>
    %c0_18 = arith.constant 0 : index
    %c0_19 = arith.constant 0 : index
    %32 = vector.load %arg8[%c0_18, %c0_19] : memref<1x32xf32, #tpu.memory_space<vmem>>, vector<1x32xf32>
    %33 = vector.broadcast %32 : vector<1x32xf32> to vector<8x32xf32>
    %34 = arith.addf %31, %33 : vector<8x32xf32>
    %35 = vector.extract_strided_slice %29 {offsets = [0, 0], sizes = [8, 8], strides = [1, 1]} : vector<8x32xf32> to vector<8x8xf32>
    %c0_20 = arith.constant 0 : index
    %c0_21 = arith.constant 0 : index
    %c0_22 = arith.constant 0 : index
    %c0_23 = arith.constant 0 : index
    %36 = vector.load %arg9[%c0_20, %c0_21, %c0_22, %c0_23] : memref<1x4x8x8xf32, #tpu.memory_space<vmem>>, vector<1x1x8x8xf32>
    %37 = vector.shape_cast %36 : vector<1x1x8x8xf32> to vector<8x8xf32>
    %38 = vector.shape_cast %35 : vector<8x8xf32> to vector<1x1x8x8xf32>
    tpu.vector_store %arg9[%c0_20, %c0_21, %c0_22, %c0_23], %38 {strides = array<i32>} : memref<1x4x8x8xf32, #tpu.memory_space<vmem>>, vector<1x1x8x8xf32>,
    %39 = vector.extract_strided_slice %34 {offsets = [0, 0], sizes = [8, 8], strides = [1, 1]} : vector<8x32xf32> to vector<8x8xf32>
    %c0_24 = arith.constant 0 : index
    %c0_25 = arith.constant 0 : index
    %c0_26 = arith.constant 0 : index
    %c0_27 = arith.constant 0 : index
    %40 = vector.load %arg10[%c0_24, %c0_25, %c0_26, %c0_27] : memref<1x4x8x8xf32, #tpu.memory_space<vmem>>, vector<1x1x8x8xf32>
    %41 = vector.shape_cast %40 : vector<1x1x8x8xf32> to vector<8x8xf32>
    %42 = vector.shape_cast %39 : vector<8x8xf32> to vector<1x1x8x8xf32>
    tpu.vector_store %arg10[%c0_24, %c0_25, %c0_26, %c0_27], %42 {strides = array<i32>} : memref<1x4x8x8xf32, #tpu.memory_space<vmem>>, vector<1x1x8x8xf32>,
    %43 = vector.extract_strided_slice %29 {offsets = [0, 8], sizes = [8, 8], strides = [1, 1]} : vector<8x32xf32> to vector<8x8xf32>
    %c0_28 = arith.constant 0 : index
    %c1 = arith.constant 1 : index
    %c0_29 = arith.constant 0 : index
    %c0_30 = arith.constant 0 : index
    %44 = vector.load %arg9[%c0_28, %c1, %c0_29, %c0_30] : memref<1x4x8x8xf32, #tpu.memory_space<vmem>>, vector<1x1x8x8xf32>
    %45 = vector.shape_cast %44 : vector<1x1x8x8xf32> to vector<8x8xf32>
    %46 = vector.shape_cast %43 : vector<8x8xf32> to vector<1x1x8x8xf32>
    tpu.vector_store %arg9[%c0_28, %c1, %c0_29, %c0_30], %46 {strides = array<i32>} : memref<1x4x8x8xf32, #tpu.memory_space<vmem>>, vector<1x1x8x8xf32>,
    %47 = vector.extract_strided_slice %34 {offsets = [0, 8], sizes = [8, 8], strides = [1, 1]} : vector<8x32xf32> to vector<8x8xf32>
    %c0_31 = arith.constant 0 : index
    %c1_32 = arith.constant 1 : index
    %c0_33 = arith.constant 0 : index
    %c0_34 = arith.constant 0 : index
    %48 = vector.load %arg10[%c0_31, %c1_32, %c0_33, %c0_34] : memref<1x4x8x8xf32, #tpu.memory_space<vmem>>, vector<1x1x8x8xf32>
    %49 = vector.shape_cast %48 : vector<1x1x8x8xf32> to vector<8x8xf32>
    %50 = vector.shape_cast %47 : vector<8x8xf32> to vector<1x1x8x8xf32>
    tpu.vector_store %arg10[%c0_31, %c1_32, %c0_33, %c0_34], %50 {strides = array<i32>} : memref<1x4x8x8xf32, #tpu.memory_space<vmem>>, vector<1x1x8x8xf32>,
    %51 = vector.extract_strided_slice %29 {offsets = [0, 16], sizes = [8, 8], strides = [1, 1]} : vector<8x32xf32> to vector<8x8xf32>
    %c0_35 = arith.constant 0 : index
    %c2 = arith.constant 2 : index
    %c0_36 = arith.constant 0 : index
    %c0_37 = arith.constant 0 : index
    %52 = vector.load %arg9[%c0_35, %c2, %c0_36, %c0_37] : memref<1x4x8x8xf32, #tpu.memory_space<vmem>>, vector<1x1x8x8xf32>
    %53 = vector.shape_cast %52 : vector<1x1x8x8xf32> to vector<8x8xf32>
    %54 = vector.shape_cast %51 : vector<8x8xf32> to vector<1x1x8x8xf32>
    tpu.vector_store %arg9[%c0_35, %c2, %c0_36, %c0_37], %54 {strides = array<i32>} : memref<1x4x8x8xf32, #tpu.memory_space<vmem>>, vector<1x1x8x8xf32>,
    %55 = vector.extract_strided_slice %34 {offsets = [0, 16], sizes = [8, 8], strides = [1, 1]} : vector<8x32xf32> to vector<8x8xf32>
    %c0_38 = arith.constant 0 : index
    %c2_39 = arith.constant 2 : index
    %c0_40 = arith.constant 0 : index
    %c0_41 = arith.constant 0 : index
    %56 = vector.load %arg10[%c0_38, %c2_39, %c0_40, %c0_41] : memref<1x4x8x8xf32, #tpu.memory_space<vmem>>, vector<1x1x8x8xf32>
    %57 = vector.shape_cast %56 : vector<1x1x8x8xf32> to vector<8x8xf32>
    %58 = vector.shape_cast %55 : vector<8x8xf32> to vector<1x1x8x8xf32>
    tpu.vector_store %arg10[%c0_38, %c2_39, %c0_40, %c0_41], %58 {strides = array<i32>} : memref<1x4x8x8xf32, #tpu.memory_space<vmem>>, vector<1x1x8x8xf32>,
    %59 = vector.extract_strided_slice %29 {offsets = [0, 24], sizes = [8, 8], strides = [1, 1]} : vector<8x32xf32> to vector<8x8xf32>
    %c0_42 = arith.constant 0 : index
    %c3 = arith.constant 3 : index
    %c0_43 = arith.constant 0 : index
    %c0_44 = arith.constant 0 : index
    %60 = vector.load %arg9[%c0_42, %c3, %c0_43, %c0_44] : memref<1x4x8x8xf32, #tpu.memory_space<vmem>>, vector<1x1x8x8xf32>
    %61 = vector.shape_cast %60 : vector<1x1x8x8xf32> to vector<8x8xf32>
    %62 = vector.shape_cast %59 : vector<8x8xf32> to vector<1x1x8x8xf32>
    tpu.vector_store %arg9[%c0_42, %c3, %c0_43, %c0_44], %62 {strides = array<i32>} : memref<1x4x8x8xf32, #tpu.memory_space<vmem>>, vector<1x1x8x8xf32>,
    %63 = vector.extract_strided_slice %34 {offsets = [0, 24], sizes = [8, 8], strides = [1, 1]} : vector<8x32xf32> to vector<8x8xf32>
    %c0_45 = arith.constant 0 : index
    %c3_46 = arith.constant 3 : index
    %c0_47 = arith.constant 0 : index
    %c0_48 = arith.constant 0 : index
    %64 = vector.load %arg10[%c0_45, %c3_46, %c0_47, %c0_48] : memref<1x4x8x8xf32, #tpu.memory_space<vmem>>, vector<1x1x8x8xf32>
    %65 = vector.shape_cast %64 : vector<1x1x8x8xf32> to vector<8x8xf32>
    %66 = vector.shape_cast %63 : vector<8x8xf32> to vector<1x1x8x8xf32>
    tpu.vector_store %arg10[%c0_45, %c3_46, %c0_47, %c0_48], %66 {strides = array<i32>} : memref<1x4x8x8xf32, #tpu.memory_space<vmem>>, vector<1x1x8x8xf32>,
    return
  }
  func.func @transform_0(%arg0: i32, %arg1: i32) -> (i32, i32, i32) {
    %c0_i32 = arith.constant 0 : i32
    %c0_i32_0 = arith.constant 0 : i32
    return %arg0, %arg1, %c0_i32 : i32, i32, i32
  }
  func.func @transform_1(%arg0: i32, %arg1: i32) -> (i32, i32) {
    %c0_i32 = arith.constant 0 : i32
    %c0_i32_0 = arith.constant 0 : i32
    %c0_i32_1 = arith.constant 0 : i32
    return %c0_i32, %c0_i32_0 : i32, i32
  }
  func.func @transform_2(%arg0: i32, %arg1: i32) -> (i32, i32) {
    %c0_i32 = arith.constant 0 : i32
    %c0_i32_0 = arith.constant 0 : i32
    %c0_i32_1 = arith.constant 0 : i32
    return %c0_i32, %c0_i32_0 : i32, i32
  }
  func.func @transform_3(%arg0: i32, %arg1: i32) -> (i32, i32) {
    %c0_i32 = arith.constant 0 : i32
    %c0_i32_0 = arith.constant 0 : i32
    %c0_i32_1 = arith.constant 0 : i32
    return %c0_i32, %c0_i32_0 : i32, i32
  }
  func.func @transform_4(%arg0: i32, %arg1: i32) -> (i32, i32) {
    %c0_i32 = arith.constant 0 : i32
    %c0_i32_0 = arith.constant 0 : i32
    %c0_i32_1 = arith.constant 0 : i32
    return %c0_i32, %c0_i32_0 : i32, i32
  }
  func.func @transform_5(%arg0: i32, %arg1: i32) -> (i32, i32) {
    %c0_i32 = arith.constant 0 : i32
    %c0_i32_0 = arith.constant 0 : i32
    %c0_i32_1 = arith.constant 0 : i32
    return %c0_i32, %c0_i32_0 : i32, i32
  }
  func.func @transform_6(%arg0: i32, %arg1: i32) -> (i32, i32) {
    %c0_i32 = arith.constant 0 : i32
    %c0_i32_0 = arith.constant 0 : i32
    %c0_i32_1 = arith.constant 0 : i32
    return %c0_i32, %c0_i32_0 : i32, i32
  }
  func.func @transform_7(%arg0: i32, %arg1: i32) -> (i32, i32, i32, i32) {
    %c0_i32 = arith.constant 0 : i32
    %c0_i32_0 = arith.constant 0 : i32
    %c0_i32_1 = arith.constant 0 : i32
    return %arg0, %c0_i32, %arg1, %c0_i32_0 : i32, i32, i32, i32
  }
  func.func @transform_8(%arg0: i32, %arg1: i32) -> (i32, i32, i32, i32) {
    %c0_i32 = arith.constant 0 : i32
    %c0_i32_0 = arith.constant 0 : i32
    %c0_i32_1 = arith.constant 0 : i32
    return %arg0, %c0_i32, %arg1, %c0_i32_0 : i32, i32, i32, i32
  }
}

</mosaic_0001>

<bundles_post_ra>
// kernel: tpu_custom_call.1
= control target key start
LH: loop header
LB: loop body
LE: loop exit
PB: predicated region body
PF: predicated region fallthrough
CT: control target
= control target key end

     0   :  { %s1892_s0 = inlined_call_operand.hbm [shape: f32[2,8,32], index: 0, kind: input, shape index: {}]   ;;  %s1893_s1 = inlined_call_operand.hbm [shape: f32[1,32], index: 1, kind: input, shape index: {}]   ;;  %s1894_s2 = inlined_call_operand.hbm [shape: f32[1,32], index: 2, kind: input, shape index: {}]   ;;  %s1895_s3 = inlined_call_operand.hbm [shape: f32[32,32], index: 3, kind: input, shape index: {}]   ;;  %s1896_s4 = inlined_call_operand.hbm [shape: f32[1,32], index: 4, kind: input, shape index: {}]   ;;  %s1897_s5 = inlined_call_operand.hbm [shape: f32[32,32], index: 5, kind: input, shape index: {}]   ;;  %s1898_s6 = inlined_call_operand.hbm [shape: f32[1,32], index: 6, kind: input, shape index: {}]   ;;  %s1899_s7 = inlined_call_operand.hbm [shape: f32[2,4,8,8], index: 7, kind: output, shape index: {0}]   ;;  %s1900_s8 = inlined_call_operand.hbm [shape: f32[2,4,8,8], index: 8, kind: output, shape index: {1}]  }
   0x1   :  { %1907 = sst [smem:[#allocation23_spill]] %s1892_s0 }
   0x2   :  { %1908 = sst [smem:[#allocation24_spill]] %s1893_s1 }
   0x3   :  { %1909 = sst [smem:[#allocation25_spill]] %s1894_s2 }
   0x4   :  { %1910 = sst [smem:[#allocation26_spill]] %s1895_s3 }
   0x5   :  { %1911 = sst [smem:[#allocation27_spill]] %s1896_s4 }
   0x6   :  { %1912 = sst [smem:[#allocation28_spill]] %s1900_s8 }
   0x7   :  { %14 = vsyncpa [#allocation3], 0 }
   0x8   :  { %16 = vsyncpa [#allocation3 + $0x1], 0 }
   0x9   :  { %17 = vsyncpa [#allocation6], 0 }
   0xa   :  { %18 = vsyncpa [#allocation9], 0 }
   0xb   :  { %19 = vsyncpa [#allocation12], 0 }
   0xc   :  { %20 = vsyncpa [#allocation4], 0 }
   0xd   :  { %22 = vsyncpa [#allocation4 + $0x1], 0 }
   0xe   :  { %23 = vsyncpa [#allocation16], 0 }
   0xf   :  { %25 = vsyncpa [#allocation16 + $0x1], 0  ;;  %s1501_s27 = smov 0   ;;  %s1503_s28 = smov 0  }
  0x10   :  { %s1505_s29 = smov 0   ;;  %s1507_s30 = smov 0  }
  0x11   :  { %s1509_s9 = smov 0   ;;  %s1511_s10 = smov 0  }
  0x12 LB: > { %s1904_s11 = sadd.s32 4294967295, %s1435_s10   ;;  %p883_p0 = scmp.ge.s32.totalorder %s1435_s10, 1  ;;  %s1435_s10 = sphi %s1511_s10, %s31_s10   ;;  %s1431_s9 = sphi %s1509_s9, %s1939_s9   ;;  %s1427_s30 = sphi %s1507_s30, %s1938_s30   ;;  %s1423_s29 = sphi %s1505_s29, %s1937_s29   ;;  %s1419_s28 = sphi %s1503_s28, %s1936_s28   ;;  %s1415_s27 = sphi %s1501_s27, %s1935_s27  }
  0x13   : > { %p1535_p1 = scmp.eq.s32.totalorder %s1904_s11, 0  ;;  %p258_p2 = scmp.lt.s32.totalorder %s1435_s10, 3 }
  0x14   : > { %s1437_s14 = smov [#allocation5]   ;;  %s1438_s16 = smov [#allocation8]  }
  0x15   : > { %s1913_s12 = scalar_select %p1535_p1, 1, 0 }
  0x16   : > { %p1540_p3 = pnand %p883_p0, %p258_p2  ;;  %s271_s15 = sshll.u32 %s1437_s14, 4  ;;  %s272_s15 = int_to_ptr.vmem [resolvable:$true] %s271_s15 }
  0x17   : > { %s292_s17 = sshll.u32 %s1438_s16, 4  ;;  %s1439_s19 = smov [#allocation11]   ;;  %s1553_s17 = int_to_ptr.vmem [resolvable:$true] %s292_s17 }
  0x18   : > { %s1914_s13 = scalar_select %p1540_p3, 1, 0 }
  0x19   : > { %p999_p5 = pneg %p1540_p3  ;;  %s1555_s20 = sshll.u32 %s1439_s19, 4  ;;  %s317_s20 = int_to_ptr.vmem [resolvable:$true] %s1555_s20 }
  0x1a   : > { %s1916_s1 = sld [smem:[#allocation24_spill]] }
  0x1b   : > { %p1549_p6 = pnand %p999_p5, %p1535_p1 }
  0x1d   : > { %p1565_p8 = pneg %p1549_p6 }
  0x20   : > { %s1111_s23 = scalar_lea.hbm %s1916_s1, 16 }
  0x21   : > { %p1112_p7 = scmp.ne.s32.totalorder %s1916_s1, %s1111_s23  ;;  %p1118_p11 = scmp.lt.u32.totalorder %s1111_s23, %s1916_s1 }
  0x23   : > { %p1114_p9 = pnand %p1565_p8, %p1112_p7 }
  0x25   : > { %p1115_p10 = pneg %p1114_p9 }
  0x27   : > { %p1120_p12 = pnand %p1118_p11, %p1115_p10 }
  0x29   : > { %1123 = shalt.err (!%p1120_p12)
}
  0x2a   : > { %s1124_s19 = scalar_lea.vmem %s272_s15, 16  ;;  %s1131_s21 = scalar_lea.vmem %s272_s15, 32 }
  0x2b   : > { %p1125_p13 = scmp.ne.s32.totalorder %s272_s15, %s1124_s19  ;;  %p1132_p5 = scmp.lt.s32.totalorder %s272_s15, %s272_s15 }
  0x2c   : > { %p1133_p4 = scmp.lt.s32.totalorder %s1131_s21, %s1124_s19 }
  0x2d   : > { %p1127_p0 = pnand %p1125_p13, %p1565_p8 }
  0x2e   : > { %p1134_p3 = por %p1133_p4, %p1132_p5 }
  0x2f   : > { %p1128_p2 = pneg %p1127_p0 }
  0x31   : > { %p1135_p1 = pnand %p1134_p3, %p1128_p2 }
  0x33   : > { %1138 = shalt.err (!%p1135_p1)
}
  0x34   : > { %1002 = dma.hbm_to_vmem [thread:$0]  (!%p1549_p6), %s1916_s1, 16, %s272_s15, [#allocation6]  }
  0x35   : > { %s1918_s3 = sld [smem:[#allocation26_spill]] }
  0x3b   : > { %s1139_s14 = scalar_lea.hbm %s1918_s3, 512 }
  0x3c   : > { %p1140_p7 = scmp.ne.s32.totalorder %s1918_s3, %s1139_s14  ;;  %p1146_p1 = scmp.lt.u32.totalorder %s1139_s14, %s1918_s3 }
  0x3e   : > { %p1142_p9 = pnand %p1140_p7, %p1565_p8 }
  0x40   : > { %p1143_p4 = pneg %p1142_p9 }
  0x42   : > { %p1148_p3 = pnand %p1146_p1, %p1143_p4 }
  0x44   : > { %1151 = shalt.err (!%p1148_p3)
}
  0x45   : > { %s1152_s15 = scalar_lea.vmem %s1553_s17, 512  ;;  %p1160_p13 = scmp.lt.s32.totalorder %s1553_s17, %s1553_s17 }
  0x46   : > { %p1153_p10 = scmp.ne.s32.totalorder %s1553_s17, %s1152_s15  ;;  %p1161_p0 = scmp.lt.s32.totalorder %s1152_s15, %s1152_s15 }
  0x48   : > { %p1155_p11 = pnand %p1153_p10, %p1565_p8  ;;  %p1162_p2 = por %p1161_p0, %p1160_p13 }
  0x4a   : > { %p1156_p12 = pneg %p1155_p11 }
  0x4c   : > { %p1163_p5 = pnand %p1162_p2, %p1156_p12 }
  0x4e   : > { %1166 = shalt.err (!%p1163_p5)
}
  0x4f   : > { %s1440_s11 = smov 128   ;;  %s1441_s22 = smov 8  }
  0x50   : > { %1008 = dma.hbm_to_vmem [thread:$0]  (!%p1549_p6), %s1918_s3, 512, %s1553_s17, [#allocation9], %s1440_s11, %s1440_s11, %s1441_s22  }
  0x51   : > { %s1167_s16 = scalar_lea.hbm %s1897_s5, 512 }
  0x52   : > { %p1168_p7 = scmp.ne.s32.totalorder %s1897_s5, %s1167_s16  ;;  %p1174_p1 = scmp.lt.u32.totalorder %s1167_s16, %s1897_s5 }
  0x54   : > { %p1170_p9 = pnand %p1168_p7, %p1565_p8 }
  0x56   : > { %p1171_p4 = pneg %p1170_p9 }
  0x58   : > { %p1176_p3 = pnand %p1174_p1, %p1171_p4 }
  0x5a   : > { %1179 = shalt.err (!%p1176_p3)
}
  0x5b   : > { %s1180_s24 = scalar_lea.vmem %s317_s20, 512  ;;  %p1188_p13 = scmp.lt.s32.totalorder %s317_s20, %s317_s20 }
  0x5c   : > { %p1181_p10 = scmp.ne.s32.totalorder %s317_s20, %s1180_s24  ;;  %p1189_p0 = scmp.lt.s32.totalorder %s1180_s24, %s1180_s24 }
  0x5e   : > { %p1183_p11 = pnand %p1181_p10, %p1565_p8  ;;  %p1190_p2 = por %p1189_p0, %p1188_p13 }
  0x60   : > { %p1184_p12 = pneg %p1183_p11 }
  0x62   : > { %p1191_p5 = pnand %p1190_p2, %p1184_p12 }
  0x64   : > { %1194 = shalt.err (!%p1191_p5)
}
  0x65   : > { %1014 = dma.hbm_to_vmem [thread:$0]  (!%p1549_p6), %s1897_s5, 512, %s317_s20, [#allocation12], %s1440_s11, %s1440_s11, %s1441_s22  }
  0x66   : > { %s1442_s1 = smov [#allocation7]   ;;  %s1443_s14 = smov [#allocation10]  }
  0x67   : > { %s282_s25 = sshll.u32 %s1442_s1, 4  ;;  %s306_s16 = sshll.u32 %s1443_s14, 4  ;;  %s283_s25 = int_to_ptr.vmem [resolvable:$true] %s282_s25  ;;  %s307_s16 = int_to_ptr.vmem [resolvable:$true] %s306_s16 }
  0x68   : > { %s1919_s2 = sld [smem:[#allocation25_spill]] }
  0x6e   : > { %s1195_s15 = scalar_lea.hbm %s1919_s2, 16 }
  0x6f   : > { %p1196_p7 = scmp.ne.s32.totalorder %s1919_s2, %s1195_s15  ;;  %p1202_p1 = scmp.lt.u32.totalorder %s1195_s15, %s1919_s2 }
  0x71   : > { %p1198_p9 = pnand %p1196_p7, %p1565_p8 }
  0x73   : > { %p1199_p4 = pneg %p1198_p9 }
  0x75   : > { %p1204_p3 = pnand %p1202_p1, %p1199_p4 }
  0x77   : > { %1207 = shalt.err (!%p1204_p3)
}
  0x78   : > { %s1208_s20 = scalar_lea.vmem %s283_s25, 16  ;;  %s1215_s11 = scalar_lea.vmem %s283_s25, 32 }
  0x79   : > { %p1209_p10 = scmp.ne.s32.totalorder %s283_s25, %s1208_s20  ;;  %p1216_p13 = scmp.lt.s32.totalorder %s283_s25, %s283_s25 }
  0x7a   : > { %p1217_p0 = scmp.lt.s32.totalorder %s1215_s11, %s1208_s20 }
  0x7b   : > { %p1211_p11 = pnand %p1209_p10, %p1565_p8 }
  0x7c   : > { %p1218_p2 = por %p1217_p0, %p1216_p13 }
  0x7d   : > { %p1212_p12 = pneg %p1211_p11 }
  0x7f   : > { %p1219_p5 = pnand %p1218_p2, %p1212_p12 }
  0x81   : > { %1222 = shalt.err (!%p1219_p5)
}
  0x82   : > { %1005 = dma.hbm_to_vmem [thread:$0]  (!%p1549_p6), %s1919_s2, 16, %s283_s25, [#allocation6]  }
  0x83   : > { %s1920_s4 = sld [smem:[#allocation27_spill]] }
  0x89   : > { %s1223_s1 = scalar_lea.hbm %s1920_s4, 16 }
  0x8a   : > { %p1224_p7 = scmp.ne.s32.totalorder %s1920_s4, %s1223_s1  ;;  %p1230_p1 = scmp.lt.u32.totalorder %s1223_s1, %s1920_s4 }
  0x8c   : > { %p1226_p9 = pnand %p1224_p7, %p1565_p8 }
  0x8e   : > { %p1227_p4 = pneg %p1226_p9 }
  0x90   : > { %p1232_p3 = pnand %p1230_p1, %p1227_p4 }
  0x92   : > { %1235 = shalt.err (!%p1232_p3)
}
  0x93   : > { %s1236_s24 = scalar_lea.vmem %s307_s16, 16  ;;  %s1243_s25 = scalar_lea.vmem %s307_s16, 32 }
  0x94   : > { %p1237_p10 = scmp.ne.s32.totalorder %s307_s16, %s1236_s24  ;;  %p1244_p13 = scmp.lt.s32.totalorder %s307_s16, %s307_s16 }
  0x95   : > { %p1245_p0 = scmp.lt.s32.totalorder %s1243_s25, %s1236_s24 }
  0x96   : > { %p1239_p11 = pnand %p1237_p10, %p1565_p8 }
  0x97   : > { %p1246_p2 = por %p1245_p0, %p1244_p13 }
  0x98   : > { %p1240_p12 = pneg %p1239_p11 }
  0x9a   : > { %p1247_p5 = pnand %p1246_p2, %p1240_p12 }
  0x9c   : > { %1250 = shalt.err (!%p1247_p5)
}
  0x9d   : > { %1011 = dma.hbm_to_vmem [thread:$0]  (!%p1549_p6), %s1920_s4, 16, %s307_s16, [#allocation9]  }
  0x9e   : > { %s1444_s11 = smov [#allocation13]   ;;  %s1251_s23 = scalar_lea.hbm %s1898_s6, 16 }
  0x9f   : > { %s330_s3 = sshll.u32 %s1444_s11, 4  ;;  %p1252_p7 = scmp.ne.s32.totalorder %s1898_s6, %s1251_s23  ;;  %s331_s3 = int_to_ptr.vmem [resolvable:$true] %s330_s3 }
  0xa0   : > { %p1258_p1 = scmp.lt.u32.totalorder %s1251_s23, %s1898_s6 }
  0xa1   : > { %p1254_p9 = pnand %p1252_p7, %p1565_p8 }
  0xa3   : > { %p1255_p4 = pneg %p1254_p9 }
  0xa5   : > { %p1260_p3 = pnand %p1258_p1, %p1255_p4 }
  0xa7   : > { %1263 = shalt.err (!%p1260_p3)
}
  0xa8   : > { %s1264_s16 = scalar_lea.vmem %s331_s3, 16  ;;  %s1271_s15 = scalar_lea.vmem %s331_s3, 32 }
  0xa9   : > { %p1265_p10 = scmp.ne.s32.totalorder %s331_s3, %s1264_s16  ;;  %p1272_p13 = scmp.lt.s32.totalorder %s331_s3, %s331_s3 }
  0xaa   : > { %p1273_p0 = scmp.lt.s32.totalorder %s1271_s15, %s1264_s16 }
  0xab   : > { %p1267_p11 = pnand %p1265_p10, %p1565_p8 }
  0xac   : > { %p1274_p2 = por %p1273_p0, %p1272_p13 }
  0xad   : > { %p1268_p12 = pneg %p1267_p11 }
  0xaf   : > { %p1275_p5 = pnand %p1274_p2, %p1268_p12 }
  0xb1   : > { %1278 = shalt.err (!%p1275_p5)
}
  0xb2   : > { %1017 = dma.hbm_to_vmem [thread:$0]  (!%p1549_p6), %s1898_s6, 16, %s331_s3, [#allocation12]  }
  0xb3   : > { %s882_s26 = sadd.s32 4294967294, %s1435_s10   ;;  %s43_s17 = sadd.s32 1, %s1431_s9 }
  0xb4   : > { %p45_p8 = scmp.ge.s32.totalorder %s43_s17, 2  ;;  %s52_s18 = sadd.s32 1, %s1423_s29 }
  0xb5   : > { %p59_p7 = scmp.ne.s32.totalorder %s1423_s29, %s1419_s28  ;;  %p60_p9 = scmp.eq.s32.totalorder %s1435_s10, 0 }
  0xb6   : > { %s1941_s17 = smov (%p45_p8, %s43_s17), 0  ;;  %p65_p1 = scmp.ne.s32.totalorder %s1419_s28, %s1415_s27 }
  0xb7   : > { %p1685_p4 = por %p60_p9, %p59_p7  ;;  %s47_s11 = ssub.s32 %s1431_s9, %s1941_s17 }
  0xb8   : > { %s1922_s3 = sadd.s32 4294967295, %s1435_s10   ;;  %p50_p3 = scmp.eq.s32.totalorder %s47_s11, 0 }
  0xb9   : > { %p217_p6 = scmp.eq.s32.totalorder %s1922_s3, 1  ;;  %p1923_p10 = scmp.ne.s32.totalorder %s1913_s12, 0 }
  0xba   : > { %p223_p13 = scmp.eq.s32.totalorder %s882_s26, 1  ;;  %p1035_p2 = scmp.lt.s32.totalorder %s1435_s10, 2 }
  0xbb   : > { %p1697_p11 = por %p1923_p10, %p65_p1  ;;  %p1701_p12 = por %p217_p6, %p59_p7 }
  0xbc   : > { %s1706_s23 = scalar_select %p50_p3, %s1423_s29, %s52_s18  }
  0xbd   : > { %s1925_s8 = scalar_select %p1701_p12, 1, 0 }
  0xbe   : > { %p1708_p0 = por %p223_p13, %p65_p1  ;;  %s341_s14 = sand.u32 1, %s1423_s29  }
  0xbf   : > { %s892_s19 = sshll.u32 %s1431_s9, 7  ;;  %s891_s21 = sshll.u32 %s341_s14, 3 }
  0xc0   : > { %s1926_s1 = scalar_select %p1708_p0, 1, 0 }
  0xc1   : > { %s1927_s0 = sld [smem:[#allocation23_spill]]  ;;  %s345_s25 = scalar_lea.vmem [#allocation2], %s891_s21 }
  0xc2   : > { %s353_s26 = sshll.u32 %s345_s25, 4  ;;  %p1722_p5 = pnand %p1035_p2, %p1685_p4  ;;  %s1726_s26 = int_to_ptr.vmem [resolvable:$true] %s353_s26 }
  0xc3   : > { %s342_s11 = scalar_lea.sflag [#allocation3], %s341_s14 }
  0xc4   : > { %p1281_p7 = pneg %p1722_p5 }
  0xc7   : > { %s1718_s24 = scalar_lea.hbm %s1927_s0, %s892_s19  ;;  %s1284_s20 = scalar_lea.hbm %s1927_s0, 256 }
  0xc8   : > { %s1279_s3 = scalar_lea.hbm %s1718_s24, 128  ;;  %p1285_p4 = scmp.lt.u32.totalorder %s1718_s24, %s1927_s0 }
  0xc9   : > { %p1280_p8 = scmp.ne.s32.totalorder %s1718_s24, %s1279_s3  ;;  %p1286_p6 = scmp.lt.u32.totalorder %s1284_s20, %s1279_s3 }
  0xca   : > { %p1288_p10 = scmp.lt.u32.totalorder %s1279_s3, %s1718_s24 }
  0xcb   : > { %p1282_p9 = pnand %p1281_p7, %p1280_p8  ;;  %p1287_p3 = por %p1286_p6, %p1285_p4 }
  0xcd   : > { %p1283_p1 = pneg %p1282_p9  ;;  %p1289_p13 = por %p1288_p10, %p1287_p3 }
  0xcf   : > { %p1290_p2 = pnand %p1289_p13, %p1283_p1 }
  0xd1   : > { %1293 = shalt.err (!%p1290_p2)
}
  0xd2   : > { %s1294_s14 = scalar_lea.vmem %s1726_s26, 128  ;;  %s1445_s25 = smov [#allocation2]  }
  0xd3   : > { %p1295_p8 = scmp.ne.s32.totalorder %s1726_s26, %s1294_s14  ;;  %s1299_s19 = sshll.u32 %s1445_s25, 4  ;;  %s1300_s19 = int_to_ptr.vmem [resolvable:$false] %s1299_s19 }
  0xd4   : > { %s1301_s21 = scalar_lea.vmem %s1300_s19, 256  ;;  %p1302_p12 = scmp.lt.s32.totalorder %s1726_s26, %s1300_s19 }
  0xd5   : > { %p1297_p9 = pnand %p1295_p8, %p1281_p7  ;;  %p1303_p4 = scmp.lt.s32.totalorder %s1301_s21, %s1294_s14 }
  0xd7   : > { %p1298_p0 = pneg %p1297_p9  ;;  %p1304_p6 = por %p1303_p4, %p1302_p12 }
  0xd9   : > { %p1305_p3 = pnand %p1304_p6, %p1298_p0 }
  0xdb   : > { %1308 = shalt.err (!%p1305_p3)
}
  0xdc   : > { %1021 = dma.hbm_to_vmem [thread:$0]  (!%p1722_p5), %s1718_s24, 128, %s1726_s26, %s342_s11  }
  0xdd   : > { %p1929_p1 = scmp.ne.s32.totalorder %s1914_s13, 0 }
  0xde   : > { %s1756_s3 = sand.u32 (!%p1929_p1), 1, %s1419_s28  }
  0xdf   : > { %362 = sbr.rel (%p1929_p1) target bundleno = 945 (0x3b1), region = 48  ;;  %s894_s20 = sshll.u32 (!%p1929_p1), %s1756_s3, 3 }
  0xe0   : > { %s365_s16 = scalar_lea.sflag (!%p1929_p1), [#allocation3], %s1756_s3  ;;  %s368_s15 = scalar_lea.vmem (!%p1929_p1), [#allocation2], %s894_s20 }
  0xe6   : > { %1390 = dma.done.wait (%p1697_p11), %s365_s16, 128  }
  0xe7   : > { %1392 = vsyncadd (%p1697_p11), %s365_s16, 4294967168  ;;  %p1930_p12 = scmp.ne.s32.totalorder %s1913_s12, 0 }
  0xe9   : > { %1394 = dma.done.wait (%p1930_p12), [#allocation6], 32  }
  0xea   : > { %1396 = vsyncadd (%p1930_p12), [#allocation6], 4294967264 }
  0xeb   : > { %1398 = dma.done.wait (%p1930_p12), [#allocation9], 528  }
  0xec   : > { %1400 = vsyncadd (%p1930_p12), [#allocation9], 4294966768 }
  0xed   : > { %1402 = dma.done.wait (%p1930_p12), [#allocation12], 528  }
  0xee   : > { %1404 = vsyncadd (%p1930_p12), [#allocation12], 4294966768  ;;  %vm433_vm0 = vcmask 261120   ;;  %v430_v0 = vld [vmem:[%s368_s15] sm:$0xff]  ;;  %v469_v7 = vld [vmem:[#allocation8] sm:$0xff]  ;;  %v1446_v10 = vmov 0.0|0.0  }
  0xef   : > { %v434_v1 = vsel %vm433_vm0, %v430_v0, 0.0  ;;  %v470_v8 = vld [vmem:[#allocation8 + $0x8] sm:$0xff]  ;;  %957 = vmatprep.subr.bf16.mxu0 %v1446_v10  ;;  %963 = vmatprep.subr.bf16.mxu1 %v1446_v10  ;;  %v471_v13 = vld [vmem:[#allocation8 + $0x10] sm:$0xff]  ;;  %v472_v14 = vld [vmem:[#allocation8 + $0x18] sm:$0xff]  ;;  %vm1447_vm1 = vmmov 0   ;;  %v1448_v18 = vmov 0.0  }
  0xf0   : > { %435 = vadd.xlane.f32.xlu0 %v434_v1  ;;  %v553_v9 = vld [vmem:[#allocation11] sm:$0xff]  ;;  %v958_v11 = vpack.c.bf16 %v470_v8, %v469_v7  ;;  %v554_v12 = vld [vmem:[#allocation11 + $0x8] sm:$0xff]  ;;  %v555_v16 = vld [vmem:[#allocation11 + $0x10] sm:$0xff]  ;;  %943 = vmatprep.mubr.msk.f32.mxu0 %vm1447_vm1, %v1448_v18  ;;  %v961_v19 = vpack.c.bf16 %v472_v14, %v471_v13  ;;  %s901_s12 = sshll.u32 %s1756_s3, 5  ;;  %vm634_vm4 = vcmask 64512   ;;  %s1449_s24 = smov 112  }
  0xf1   : > { %v964_v15 = vpack.c.bf16 %v554_v12, %v553_v9  ;;  %v556_v17 = vld [vmem:[#allocation11 + $0x18] sm:$0xff]  ;;  %954 = vmatprep.mubr.msk.f32.mxu1 %vm1447_vm1, %v1448_v18  ;;  %v907_v36 = vld [vmem:[#allocation13] ss:$0 sm:$0xff]  ;;  %s422_s13 = scalar_lea.vmem [#allocation14], %s901_s12  ;;  %s1782_s22 = scalar_lea.vmem [#allocation15], %s901_s12 }
  0xf2   : > { %959 = vmatpush3.bf16.msra.mxu0 %v958_v11  ;;  %v967_v20 = vpack.c.bf16 %v556_v17, %v555_v16  ;;  %v903_v29 = vld [vmem:[#allocation5] ss:$0 sm:$0xff]  ;;  %v904_v32 = vld [vmem:[#allocation7] ss:$0 sm:$0xff]  ;;  %v905_v35 = vld [vmem:[#allocation10] ss:$0 sm:$0xff] }
  0xf3   : > { %965 = vmatpush3.bf16.msra.mxu1 %v964_v15  ;;  %960 = vmatprep.subr.bf16.mxu0 %v1446_v10  ;;  %s1450_s26 = smov 120   ;;  %s1451_s18 = smov 104  }
  0xf4   : > { %966 = vmatprep.subr.bf16.mxu1 %v1446_v10  ;;  %s689_s11 = sshll.u32 %s422_s13, 4  ;;  %s923_s14 = sshll.u32 %s1427_s30, 9  ;;  %s1791_s11 = int_to_ptr.vmem [resolvable:$true] %s689_s11 }
  0xf5   : > { %s706_s25 = sshll.u32 %s1782_s22, 4  ;;  %s1801_s20 = scalar_lea.hbm %s1899_s7, %s923_s14  ;;  %s1803_s25 = int_to_ptr.vmem [resolvable:$true] %s706_s25 }
  0xf6   : > { %962 = vmatpush3.bf16.msra.mxu0 %v961_v19  ;;  %s670_s16 = scalar_lea.sflag [#allocation4], %s1756_s3  ;;  %s1309_s15 = scalar_lea.vmem %s1791_s11, 512 }
  0xf7   : > { %968 = vmatpush3.bf16.msra.mxu1 %v967_v20  ;;  %p1310_p11 = scmp.ne.s32.totalorder %s1791_s11, %s1309_s15  ;;  %p1931_p0 = scmp.ne.s32.totalorder %s1925_s8, 0 }
  0xf8   : > { %s1452_s12 = smov [#allocation14]  }
  0xf9   : > { %p1311_p5 = pnand %p1310_p11, %p1931_p0 }
  0xfb   : > { %p1312_p7 = pneg %p1311_p5 }
 0x17d   : > { %v436_v2 = vpop.xlane.xlu0 %435 }
 0x17e   : > { %v438_v3 = vmul.f32 0.03125, %v436_v2 }
 0x180   : > { %v439_v4 = vsub.f32 %v430_v0, %v438_v3 }
 0x182   : > { %v440_v5 = vmul.f32 %v439_v4, %v439_v4  ;;  %v460_v30 = vmul.f32 %v903_v29, %v439_v4 }
 0x184   : > { %v441_v6 = vsel %vm433_vm0, %v440_v5, 0.0 }
 0x185   : > { %442 = vadd.xlane.f32.xlu0 %v441_v6 }
 0x212   : > { %v443_v21 = vpop.xlane.xlu0 %442 }
 0x213   : > { %v444_v22 = vmul.f32 0.032258064, %v443_v21 }
 0x215   : > { %1107 = vrsqrt.f32 %v444_v22  ;;  %vm447_vm2 = vcmp.eq.f32.partialorder %v444_v22, inf  ;;  %v450_v25 = vand.u32 2147483648, %v444_v22  ;;  %vm449_vm3 = vcmp.eq.f32.partialorder %v444_v22, 0.0 }
 0x21f   : > { %v1108_v23 = vpop.eup %1107 }
 0x220   : > { %v446_v24 = vmul.f32 %v1108_v23, %v444_v22 }
 0x222   : > { %v448_v26 = vsel %vm447_vm2, %v444_v22, %v446_v24 }
 0x223   : > { %v451_v27 = vsel %vm449_vm3, %v450_v25, %v448_v26 }
 0x224   : > { %v452_v28 = vadd.f32 1e-06, %v451_v27 }
 0x226   : > { %1109 = vrcp.f32 %v452_v28 }
 0x230   : > { %v1110_v31 = vpop.eup %1109 }
 0x231   : > { %v461_v33 = vmul.f32 %v1110_v31, %v460_v30 }
 0x233   : > { %v468_v34 = vadd.f32 %v904_v32, %v461_v33 }
 0x235   : > { %944 = vmatmul.mubr.msk.f32.vlgmr.msra.gmra.mrb[0].mxu0 %vm433_vm0, %v468_v34  ;;  %955 = vmatmul.mubr.msk.f32.vlgmr.msra.gmra.mrb[0].mxu1 %vm433_vm0, %v468_v34 }
 0x308   : > { %v549_v37 = vpop.f32.mrb[0].mxu0  ;;  %v630_v38 = vpop.f32.mrb[0].mxu1 }
 0x309   : > { %v550_v39 = vadd.f32 %v905_v35, %v549_v37  ;;  %v631_v40 = vadd.f32 %v907_v36, %v630_v38  ;;  %v945_v41 = vpop.f32.mrb[1].mxu0  ;;  %v956_v42 = vpop.f32.mrb[1].mxu1 }
 0x30b   : > { %635 = vst.msk [vmem:[%s422_s13] sm:$0xff] %vm634_vm4, %v550_v39  ;;  %636 = vst.msk [vmem:[%s1782_s22] sm:$0xff] %vm634_vm4, %v631_v40  ;;  %649 = vrot.lane.b32.xlu0 %v550_v39, %s1449_s24  ;;  %638 = vrot.lane.b32.xlu1 %v550_v39, %s1450_s26 }
 0x30f   : > { %644 = vrot.lane.b32.xlu1 %v631_v40, %s1450_s26 }
 0x313   : > { %654 = vrot.lane.b32.xlu1 %v631_v40, %s1449_s24  ;;  %s1313_s24 = sshll.u32 %s1452_s12, 4  ;;  %s1314_s24 = int_to_ptr.vmem [resolvable:$false] %s1313_s24 }
 0x314   : > { %s1315_s26 = scalar_lea.vmem %s1314_s24, 1024  ;;  %p1316_p10 = scmp.lt.s32.totalorder %s1791_s11, %s1314_s24 }
 0x315   : > { %p1317_p13 = scmp.lt.s32.totalorder %s1315_s26, %s1309_s15 }
 0x317   : > { %659 = vrot.lane.b32.xlu1 %v550_v39, %s1451_s18  ;;  %p1318_p2 = por %p1317_p13, %p1316_p10 }
 0x319   : > { %p1319_p8 = pnand %p1318_p2, %p1312_p7 }
 0x31b   : > { %664 = vrot.lane.b32.xlu1 %v631_v40, %s1451_s18 }
 0x37d   : > { %v650_v43 = vpop.permute.xlu0 %649  ;;  %v639_v44 = vpop.permute.xlu1 %638 }
 0x37e   : > { %911 = vst.msk [vmem:[%s422_s13 + $0x10] sm:$0xff] %vm634_vm4, %v650_v43  ;;  %909 = vst.msk [vmem:[%s422_s13 + $0x8] sm:$0xff] %vm634_vm4, %v639_v44 }
 0x381   : > { %v645_v45 = vpop.permute.xlu1 %644 }
 0x382   : > { %910 = vst.msk [vmem:[%s1782_s22 + $0x8] sm:$0xff] %vm634_vm4, %v645_v45 }
 0x385   : > { %v655_v46 = vpop.permute.xlu1 %654 }
 0x386   : > { %912 = vst.msk [vmem:[%s1782_s22 + $0x10] sm:$0xff] %vm634_vm4, %v655_v46 }
 0x389   : > { %v660_v47 = vpop.permute.xlu1 %659 }
 0x38a   : > { %913 = vst.msk [vmem:[%s422_s13 + $0x18] sm:$0xff] %vm634_vm4, %v660_v47 }
 0x38b   : > { %1322 = shalt.err (!%p1319_p8)
}
 0x38c   : > { %s1323_s13 = scalar_lea.hbm %s1801_s20, 512  ;;  %s1327_s21 = scalar_lea.hbm %s1899_s7, 1024 }
 0x38d   : > { %p1324_p9 = scmp.ne.s32.totalorder %s1801_s20, %s1323_s13  ;;  %p1328_p3 = scmp.lt.u32.totalorder %s1801_s20, %s1899_s7 }
 0x38e   : > { %p1329_p1 = scmp.lt.u32.totalorder %s1327_s21, %s1323_s13  ;;  %p1331_p11 = scmp.lt.u32.totalorder %s1323_s13, %s1801_s20 }
 0x38f   : > { %p1325_p4 = pnand %p1324_p9, %p1931_p0 }
 0x390   : > { %p1330_p12 = por %p1329_p1, %p1328_p3 }
 0x391   : > { %p1326_p6 = pneg %p1325_p4 }
 0x392   : > { %p1332_p5 = por %p1331_p11, %p1330_p12 }
 0x394   : > { %p1333_p7 = pnand %p1332_p5, %p1326_p6 }
 0x396   : > { %1336 = shalt.err (!%p1333_p7)
}
 0x397   : > { %s1453_s15 = smov 128   ;;  %s1454_s26 = smov 8   ;;  %v665_v48 = vpop.permute.xlu1 %664 }
 0x398   : > { %995 = dma.vmem_to_hbm [thread:$0]  (%p1931_p0), %s1791_s11, 512, %s1801_s20, %s670_s16, %s1453_s15, %s1453_s15, %s1454_s26  }
 0x399   : > { %s1932_s19 = sld [smem:[#allocation28_spill]]  ;;  %914 = vst.msk [vmem:[%s1782_s22 + $0x18] sm:$0xff] %vm634_vm4, %v665_v48  ;;  %s675_s12 = scalar_lea.sflag [#allocation16], %s1756_s3 }
 0x39a   : > { %s1337_s24 = scalar_lea.vmem %s1803_s25, 512  ;;  %s1455_s0 = smov [#allocation15]  }
 0x39b   : > { %p1338_p10 = scmp.ne.s32.totalorder %s1803_s25, %s1337_s24  ;;  %s1341_s2 = sshll.u32 %s1455_s0, 4  ;;  %s1342_s2 = int_to_ptr.vmem [resolvable:$false] %s1341_s2 }
 0x39c   : > { %s1343_s4 = scalar_lea.vmem %s1342_s2, 1024  ;;  %p1344_p8 = scmp.lt.s32.totalorder %s1803_s25, %s1342_s2 }
 0x39d   : > { %p1339_p13 = pnand %p1338_p10, %p1931_p0  ;;  %p1345_p9 = scmp.lt.s32.totalorder %s1343_s4, %s1337_s24 }
 0x39f   : > { %s1838_s21 = scalar_lea.hbm %s1932_s19, %s923_s14  ;;  %p1340_p2 = pneg %p1339_p13 }
 0x3a0   : > { %p1346_p4 = por %p1345_p9, %p1344_p8 }
 0x3a2   : > { %p1347_p6 = pnand %p1346_p4, %p1340_p2 }
 0x3a4   : > { %1350 = shalt.err (!%p1347_p6)
}
 0x3a5   : > { %s1351_s30 = scalar_lea.hbm %s1838_s21, 512  ;;  %s1355_s0 = scalar_lea.hbm %s1932_s19, 1024 }
 0x3a6   : > { %p1352_p3 = scmp.ne.s32.totalorder %s1838_s21, %s1351_s30  ;;  %p1356_p11 = scmp.lt.u32.totalorder %s1838_s21, %s1932_s19 }
 0x3a7   : > { %p1357_p5 = scmp.lt.u32.totalorder %s1355_s0, %s1351_s30  ;;  %p1359_p10 = scmp.lt.u32.totalorder %s1351_s30, %s1838_s21 }
 0x3a8   : > { %p1353_p1 = pnand %p1352_p3, %p1931_p0 }
 0x3a9   : > { %p1358_p7 = por %p1357_p5, %p1356_p11 }
 0x3aa   : > { %p1354_p12 = pneg %p1353_p1 }
 0x3ab   : > { %p1360_p13 = por %p1359_p10, %p1358_p7 }
 0x3ad   : > { %p1361_p2 = pnand %p1360_p13, %p1354_p12 }
 0x3af   : > { %1364 = shalt.err (!%p1361_p2)
}
 0x3b0   : > { %996 = dma.vmem_to_hbm [thread:$0]  (%p1931_p0), %s1803_s25, 512, %s1838_s21, %s675_s12, %s1453_s15, %s1453_s15, %s1454_s26  }
 0x3b1 PF: > { %s721_s4 = sand.u32 1, %s1415_s27   ;;  %p1933_p8 = scmp.ne.s32.totalorder %s1926_s1, 0 }
 0x3b2   : > { %p1934_p9 = scmp.ge.s32.totalorder %s1435_s10, 2  ;;  %s722_s20 = scalar_lea.sflag [#allocation4], %s721_s4 }
 0x3b4   : > { %p1023_p4 = pnand %p1934_p9, %p1933_p8 }
 0x3b6   : > { %1406 = dma.done.wait (!%p1023_p4), %s722_s20, 512  }
 0x3b7   : > { %1408 = vsyncadd (!%p1023_p4), %s722_s20, 4294966784  ;;  %s731_s8 = scalar_lea.sflag [#allocation16], %s721_s4 }
 0x3b8   : > { %1410 = dma.done.wait (!%p1023_p4), %s731_s8, 512  }
 0x3b9   : > { %1412 = vsyncadd (!%p1023_p4), %s731_s8, 4294966784  ;;  %s31_s10 = sadd.s32 1, %s1435_s10   ;;  %s1935_s27 = smov %s1419_s28 }
 0x3ba   : > { %p28_p6 = scmp.ge.s32.totalorder %s31_s10, 4   ;;  %s1936_s28 = smov %s1423_s29 }
 0x3bb   : > { %s1937_s29 = smov %s1706_s23  ;;  %s1938_s30 = smov %s1431_s9 }
 0x3bc   : > { %s1939_s9 = smov %s1941_s17  ;;  %30 = sbr.rel (!%p28_p6) target bundleno = 18 (0x12), region = 140 }
 0x3c3   :  { %736 = vsyncpa [#allocation3], 1 }
 0x3c4   :  { %738 = vsyncpa [#allocation3 + $0x1], 1 }
 0x3c5   :  { %739 = vsyncpa [#allocation6], 1 }
 0x3c6   :  { %740 = vsyncpa [#allocation9], 1 }
 0x3c7   :  { %741 = vsyncpa [#allocation12], 1 }
 0x3c8   :  { %742 = vsyncpa [#allocation4], 1 }
 0x3c9   :  { %744 = vsyncpa [#allocation4 + $0x1], 1 }
 0x3ca   :  { %745 = vsyncpa [#allocation16], 1 }
 0x3cb   :  { %747 = vsyncpa [#allocation16 + $0x1], 1 }

</bundles_post_ra>
